<compile_context>
chip_gen: v7x
topology: tpu7x:2x2x1
jax: 0.10.0
libtpu: 0.0.40
codegen_flags: <defaults>
</compile_context>

<pallas_src>
import math

import jax
import jax.numpy as jnp
from jax.experimental import pallas as pl
from jax.experimental.pallas import tpu as pltpu

_LANE = 128
_VMEM_LIMIT_BYTES = 32 * 1024 * 1024      # scoped-VMEM request; safe on v5e/v6e/v7x
_FUSED_VMEM_BUDGET = 12 * 1024 * 1024     # per-batch block budget for the fused path
_ROWS_STREAM_BUDGET = 8 * 1024 * 1024     # double-buffered x stream; fits v5e default


def _round_up(v, m):
    return (v + m - 1) // m * m


def _sublane_pack(dtype):
    # sublane packing of the activation dtype: f32 -> 8, bf16 -> 16, int8/fp8 -> 32
    return {4: 8, 2: 16, 1: 32}.get(jnp.dtype(dtype).itemsize, 8)


def _fused_kernel(x_ref, wt_ref, b_ref, o_ref):
    """Per-batch: o = x[1:, :] @ Wt + b (CLS row dropped in-kernel).

    x_ref:  (1, S, H)    one batch item's full sequence (contiguous DMA)
    wt_ref: (H, R)       weight pre-laid-out as (in, out); standard (1,0) contraction
    b_ref:  (1, R) f32
    o_ref:  (1, S-1, R)
    """
    x = x_ref[0]                                   # (S, H)
    acc = jnp.dot(x[1:, :], wt_ref[...],           # drop CLS row, MXU f32 accum
                  preferred_element_type=jnp.float32)
    o_ref[0] = (acc + b_ref[...]).astype(o_ref.dtype)


def _rows_kernel(x_ref, wt_ref, b_ref, o_ref):
    """Row-tiled fallback: o = x @ Wt + b on (block_m, H) tiles."""
    acc = jnp.dot(x_ref[...], wt_ref[...], preferred_element_type=jnp.float32)
    o_ref[...] = (acc + b_ref[...]).astype(o_ref.dtype)


def _pick_block_m(M, H, itemsize, pack):
    """Row-tile size from a VMEM budget (double-buffered, lane-padded x)."""
    bm = _ROWS_STREAM_BUDGET // max(1, 2 * _round_up(H, _LANE) * itemsize)
    bm = max(pack, (bm // pack) * pack)
    bm = min(bm, 4096)
    # v7x has 2 TensorCores sharing the "parallel" grid: aim for >= ~4 tiles
    # so neither core idles (no-op on single-TC v5e/v6e).
    bm = min(bm, max(pack, _round_up(pl.cdiv(M, 4), pack)))
    return bm


def spo2_fc(hidden, weight, bias, *, force_rows=False):
    """Spo2Net head: fc(last_hidden_state[:, 1:, :]).reshape(B, -1).

    hidden: (B, S, H) backbone last_hidden_state
    weight: (R, H)    torch nn.Linear weight (out_features, in_features)
    bias:   (R,)
    returns (B, (S-1)*R)
    """
    B, S, H = hidden.shape
    R = weight.shape[0]
    it = jnp.dtype(hidden.dtype).itemsize
    pack = _sublane_pack(hidden.dtype)

    # One-time, grid-invariant layout work in the wrapper (tiny arrays):
    wt = weight.T                                   # (H, R): standard contraction
    b2 = bias.reshape(1, R).astype(jnp.float32)     # f32 once, not per grid step

    # VMEM footprint estimate of the fused per-batch path (lane/sublane padded,
    # double-buffered activation + output, resident weight).
    fused_bytes = (
        2 * _round_up(S, pack) * _round_up(H, _LANE) * it
        + 2 * _round_up(S - 1, pack) * _round_up(R, _LANE) * it
        + _round_up(H, pack) * _round_up(R, _LANE) * it
    )

    if (not force_rows) and fused_bytes <= _FUSED_VMEM_BUDGET:
        # ---- Primary path: fused CLS-drop, grid over batch ---------------
        cost = pl.CostEstimate(
            flops=2 * B * (S - 1) * H * R,
            transcendentals=0,
            bytes_accessed=(B * S * H + H * R + B * (S - 1) * R) * it + R * 4,
        )
        y = pl.pallas_call(
            _fused_kernel,
            out_shape=jax.ShapeDtypeStruct((B, S - 1, R), hidden.dtype),
            grid=(B,),
            in_specs=[
                pl.BlockSpec((1, S, H), lambda b: (b, 0, 0)),
                pl.BlockSpec((H, R), lambda b: (0, 0)),
                pl.BlockSpec((1, R), lambda b: (0, 0)),
            ],
            out_specs=pl.BlockSpec((1, S - 1, R), lambda b: (b, 0, 0)),
            compiler_params=pltpu.CompilerParams(
                dimension_semantics=("parallel",),
                vmem_limit_bytes=_VMEM_LIMIT_BYTES,
            ),
            cost_estimate=cost,
        )(hidden, wt, b2)
        # Contiguous minor-dim merge: free metadata reshape, no second HBM pass.
        return y.reshape(B, (S - 1) * R)

    # ---- Fallback path: row-tiled over B*S rows (huge S*H per batch) ------
    # Never pulls the whole activation into VMEM: cdiv grid handles ragged M,
    # Pallas masks the partial trailing block.  CLS rows are computed then
    # dropped on the (small) output side.
    M = B * S
    x = hidden.reshape(M, H)                        # free contiguous view
    block_m = _pick_block_m(M, H, it, pack)
    cost = pl.CostEstimate(
        flops=2 * M * H * R,
        transcendentals=0,
        bytes_accessed=(M * H + H * R + M * R) * it + R * 4,
    )
    y = pl.pallas_call(
        _rows_kernel,
        out_shape=jax.ShapeDtypeStruct((M, R), hidden.dtype),
        grid=(pl.cdiv(M, block_m),),
        in_specs=[
            pl.BlockSpec((block_m, H), lambda i: (i, 0)),
            pl.BlockSpec((H, R), lambda i: (0, 0)),
            pl.BlockSpec((1, R), lambda i: (0, 0)),
        ],
        out_specs=pl.BlockSpec((block_m, R), lambda i: (i, 0)),
        compiler_params=pltpu.CompilerParams(
            dimension_semantics=("parallel",),
            vmem_limit_bytes=_VMEM_LIMIT_BYTES,
        ),
        cost_estimate=cost,
    )(x, wt, b2)
    return y.reshape(B, S, R)[:, 1:, :].reshape(B, (S - 1) * R)


if __name__ == "__main__":
    key = jax.random.PRNGKey(0)
    # batch=2, seq = 1 CLS + 8 tokens, hidden_size=32, spo2_resolution_per_token=30
    B, S, H, R = 2, 9, 32, 30
    k_h, k_w, k_b = jax.random.split(key, 3)

    # TODO(synk): SleepNetZeroBackbone is an external, undefined module; its
    # last_hidden_state is modeled here as a deterministic random tensor.
    hidden = jax.random.normal(k_h, (B, S, H), dtype=jnp.float32)

    # Deterministic nn.Linear-style init: U(-1/sqrt(H), 1/sqrt(H)).
    bound = 1.0 / math.sqrt(H)
    weight = jax.random.uniform(k_w, (R, H), minval=-bound, maxval=bound,
                                dtype=jnp.float32)
    bias = jax.random.uniform(k_b, (R,), minval=-bound, maxval=bound,
                              dtype=jnp.float32)

    spo2_head = jax.jit(spo2_fc, static_argnames=("force_rows",))

    ref = (hidden[:, 1:, :] @ weight.T + bias).reshape(B, -1)

    # f32, fused per-batch path (primary).
    out = jax.block_until_ready(spo2_head(hidden, weight, bias))
    assert out.shape == (B, (S - 1) * R), out.shape
    assert jnp.allclose(out, ref, atol=1e-5), float(jnp.max(jnp.abs(out - ref)))

    # f32, row-tiled fallback path (exercises cdiv grid + partial trailing block).
    out_rows = jax.block_until_ready(spo2_head(hidden, weight, bias,
                                               force_rows=True))
    assert out_rows.shape == (B, (S - 1) * R), out_rows.shape
    assert jnp.allclose(out_rows, ref, atol=1e-5), float(
        jnp.max(jnp.abs(out_rows - ref)))

    # bf16 path (typical backbone activation dtype): same fused kernel,
    # bf16-native MXU with f32 accumulation.
    hidden_bf = hidden.astype(jnp.bfloat16)
    weight_bf = weight.astype(jnp.bfloat16)
    bias_bf = bias.astype(jnp.bfloat16)
    out_bf = jax.block_until_ready(spo2_head(hidden_bf, weight_bf, bias_bf))
    ref_bf = (
        jnp.dot(hidden_bf[:, 1:, :], weight_bf.T,
                preferred_element_type=jnp.float32)
        + bias_bf.astype(jnp.float32)
    ).astype(jnp.bfloat16).reshape(B, -1)
    assert out_bf.shape == (B, (S - 1) * R), out_bf.shape
    assert jnp.allclose(out_bf.astype(jnp.float32), ref_bf.astype(jnp.float32),
                        atol=2e-2), float(
        jnp.max(jnp.abs(out_bf.astype(jnp.float32) - ref_bf.astype(jnp.float32))))

    print("KERNEL_OK")
</pallas_src>

<mosaic_0001>
module attributes {stable_mosaic.version = 11 : i64} {
  func.func @_fused_kernel(%arg0: i32, %arg1: memref<1x9x32xf32, #tpu.memory_space<vmem>>, %arg2: memref<32x30xf32, #tpu.memory_space<vmem>>, %arg3: memref<1x30xf32, #tpu.memory_space<vmem>>, %arg4: memref<1x8x30xf32, #tpu.memory_space<vmem>>) attributes {dimension_semantics = [#tpu.dimension_semantics<parallel>], iteration_bounds = array<i64: 2>, scalar_prefetch = 0 : i64, scratch_operands = 0 : i64, tpu.core_type = #tpu.core_type<tc>, window_params = [{transform_indices = @transform_0, window_bounds = array<i64: 1, 9, 32>}, {pipeline_mode = #tpu.pipeline_mode<synchronous>, transform_indices = @transform_1, window_bounds = array<i64: 32, 30>}, {pipeline_mode = #tpu.pipeline_mode<synchronous>, transform_indices = @transform_2, window_bounds = array<i64: 1, 30>}, {transform_indices = @transform_3, window_bounds = array<i64: 1, 8, 30>}]} {
    %c0 = arith.constant 0 : index
    %c0_0 = arith.constant 0 : index
    %c0_1 = arith.constant 0 : index
    %0 = vector.load %arg1[%c0, %c0_0, %c0_1] : memref<1x9x32xf32, #tpu.memory_space<vmem>>, vector<1x9x32xf32>
    %1 = vector.shape_cast %0 : vector<1x9x32xf32> to vector<9x32xf32>
    %2 = vector.extract_strided_slice %1 {offsets = [1, 0], sizes = [8, 32], strides = [1, 1]} : vector<9x32xf32> to vector<8x32xf32>
    %c0_2 = arith.constant 0 : index
    %c0_3 = arith.constant 0 : index
    %3 = vector.load %arg2[%c0_2, %c0_3] : memref<32x30xf32, #tpu.memory_space<vmem>>, vector<32x30xf32>
    %cst = arith.constant dense<0.000000e+00> : vector<8x30xf32>
    %4 = tpu.matmul %2, %3, %cst {dimension_numbers = #tpu.dot_dimension_numbers<[1], [0], [0], [1], [0, 0, 1, 1], [], []>} : vector<8x32xf32>, vector<32x30xf32>, vector<8x30xf32> -> vector<8x30xf32>
    %c0_4 = arith.constant 0 : index
    %c0_5 = arith.constant 0 : index
    %5 = vector.load %arg3[%c0_4, %c0_5] : memref<1x30xf32, #tpu.memory_space<vmem>>, vector<1x30xf32>
    %6 = vector.broadcast %5 : vector<1x30xf32> to vector<8x30xf32>
    %7 = arith.addf %4, %6 : vector<8x30xf32>
    %c0_6 = arith.constant 0 : index
    %c0_7 = arith.constant 0 : index
    %c0_8 = arith.constant 0 : index
    %8 = vector.load %arg4[%c0_6, %c0_7, %c0_8] : memref<1x8x30xf32, #tpu.memory_space<vmem>>, vector<1x8x30xf32>
    %9 = vector.shape_cast %8 : vector<1x8x30xf32> to vector<8x30xf32>
    %10 = vector.shape_cast %7 : vector<8x30xf32> to vector<1x8x30xf32>
    tpu.vector_store %arg4[%c0_6, %c0_7, %c0_8], %10 {strides = array<i32>} : memref<1x8x30xf32, #tpu.memory_space<vmem>>, vector<1x8x30xf32>,
    return
  }
  func.func @transform_0(%arg0: i32) -> (i32, i32, i32) {
    %c0_i32 = arith.constant 0 : i32
    %c0_i32_0 = arith.constant 0 : i32
    %c0_i32_1 = arith.constant 0 : i32
    return %arg0, %c0_i32, %c0_i32_0 : i32, i32, i32
  }
  func.func @transform_1(%arg0: i32) -> (i32, i32) {
    %c0_i32 = arith.constant 0 : i32
    %c0_i32_0 = arith.constant 0 : i32
    %c0_i32_1 = arith.constant 0 : i32
    return %c0_i32, %c0_i32_0 : i32, i32
  }
  func.func @transform_2(%arg0: i32) -> (i32, i32) {
    %c0_i32 = arith.constant 0 : i32
    %c0_i32_0 = arith.constant 0 : i32
    %c0_i32_1 = arith.constant 0 : i32
    return %c0_i32, %c0_i32_0 : i32, i32
  }
  func.func @transform_3(%arg0: i32) -> (i32, i32, i32) {
    %c0_i32 = arith.constant 0 : i32
    %c0_i32_0 = arith.constant 0 : i32
    %c0_i32_1 = arith.constant 0 : i32
    return %arg0, %c0_i32, %c0_i32_0 : i32, i32, i32
  }
}

</mosaic_0001>

<bundles_post_ra>
// kernel: spo2_fc.1
= control target key start
LH: loop header
LB: loop body
LE: loop exit
PB: predicated region body
PF: predicated region fallthrough
CT: control target
= control target key end

     0   :  { %s393_s12 = smov 0   ;;  %s425_s0 = inlined_call_operand.vmem [shape: f32[2,9,32], index: 0, kind: input, shape index: {}]   ;;  %s426_s1 = inlined_call_operand.vmem [shape: f32[32,30], index: 1, kind: input, shape index: {}]   ;;  %s427_s2 = inlined_call_operand.vmem [shape: f32[1,30], index: 2, kind: input, shape index: {}]   ;;  %s428_s3 = inlined_call_operand.vmem [shape: f32[2,8,30], index: 3, kind: output, shape index: {}]  }
   0x1 LB: > { %s316_s13 = sadd.s32 4294967295, %s368_s12   ;;  %p320_p0 = scmp.ge.s32.totalorder %s368_s12, 1  ;;  %s368_s12 = sphi %s393_s12, %s13_s12  }
   0x2   : > { %p137_p1 = scmp.lt.s32.totalorder %s368_s12, 3 }
   0x4   : > { %p138_p2 = pnand %p320_p0, %p137_p1 }
   0x5   : > { %v171_v0 = vld [vmem:[%s426_s1] sm:$0xff] (!%p138_p2)  ;;  %v172_v1 = vld [vmem:[%s426_s1 + $0x8] sm:$0xff] (!%p138_p2)  ;;  %v173_v2 = vld [vmem:[%s426_s1 + $0x10] sm:$0xff] (!%p138_p2)  ;;  %v370_v3 = vmov (!%p138_p2), 0.0|0.0   ;;  %vm371_vm0 = vmmov (!%p138_p2), 0   ;;  %v372_v6 = vmov (!%p138_p2), 0.0  }
   0x6   : > { %141 = sbr.rel (%p138_p2) target bundleno = 235 (0xeb), region = 32  ;;  %345 = vmatprep.subr.bf16.mxu0 (!%p138_p2), %v370_v3  ;;  %v346_v4 = vpack.c.bf16 (!%p138_p2), %v172_v1, %v171_v0  ;;  %v174_v5 = vld [vmem:[%s426_s1 + $0x18] sm:$0xff] (!%p138_p2)  ;;  %342 = vmatprep.mubr.msk.f32.mxu0 (!%p138_p2), %vm371_vm0, %v372_v6  ;;  %p160_p3 = scmp.lt.s32.totalorder (!%p138_p2), %s316_s13, 1  ;;  %vm184_vm1 = vcmask (!%p138_p2), 1046528   ;;  %vm188_vm2 = vcmask (!%p138_p2), 261120   ;;  %vm261_vm3 = vcmask (!%p138_p2), 244736  }
   0x7   : > { %v349_v7 = vpack.c.bf16 (!%p138_p2), %v174_v5, %v173_v2  ;;  %v324_v13 = vld [vmem:[%s427_s2] ss:$0 sm:$0xff] (!%p138_p2) }
   0x8   : > { %347 = vmatpush3.bf16.msra.mxu0 (!%p138_p2), %v346_v4 }
   0x9   : > { %348 = vmatprep.subr.bf16.mxu0 (!%p138_p2), %v370_v3 }
   0xc   : > { %350 = vmatpush3.bf16.msra.mxu0 (!%p138_p2), %v349_v7 }
   0xd   : > { %s430_s13 = smov (!%p160_p3, %s316_s13), 1 }
   0xe   : > { %s328_s22 = sshll.u32 %s430_s13, 4  ;;  %s323_s26 = sshll.u32 %s430_s13, 3 }
   0xf   : > { %s164_s25 = scalar_lea.vmem %s425_s0, %s328_s22  ;;  %s168_s4 = scalar_lea.vmem %s428_s3, %s323_s26 }
  0x10   : > { %v169_v8 = vld [vmem:[%s164_s25] sm:$0xff]  ;;  %v170_v9 = vld [vmem:[%s164_s25 + $0x8] sm:$0x1] }
  0x11   : > { %v185_v10 = vrot.slane %v169_v8, 1  ;;  %v186_v11 = vrot.slane %v170_v9, 1 }
  0x13   : > { %v187_v12 = vsel %vm184_vm1, %v185_v10, %v186_v11 }
  0x14   : > { %343 = vmatmul.mubr.msk.f32.vlgmr.msra.gmra.mrb[0].mxu0 %vm188_vm2, %v187_v12 }
  0xe7   : > { %v257_v14 = vpop.f32.mrb[0].mxu0 }
  0xe8   : > { %v258_v15 = vadd.f32 %v324_v13, %v257_v14  ;;  %v344_v16 = vpop.f32.mrb[1].mxu0 }
  0xea   : > { %262 = vst.msk [vmem:[%s168_s4] sm:$0xff] %vm261_vm3, %v258_v15 }
  0xeb PF: > { %s13_s12 = sadd.s32 1, %s368_s12  }
  0xec   : > { %p10_p4 = scmp.ge.s32.totalorder %s13_s12, 4  }
  0xee   :  { %12 = sbr.rel (!%p10_p4) target bundleno = 1 (0x1), region = 62 }

</bundles_post_ra>
